<compile_context>
chip_gen: v7x
topology: tpu7x:2x2x1
jax: 0.10.0
libtpu: 0.0.40
codegen_flags: <defaults>
</compile_context>

<pallas_src>
import jax
import jax.numpy as jnp
import numpy as np
from jax.experimental import pallas as pl
from jax.experimental.pallas import tpu as pltpu


def _round_up(n, m):
    return ((n + m - 1) // m) * m


def _ceil_div(a, b):
    return (a + b - 1) // b


def _unit_classifier2_kernel(x_ref, att_t_ref, colscale_ref, out_ref, rowscale_ref):
    """One (tm, tn) output tile.

    x_ref:        (tm, D)  raw image features (native / matmul dtype)
    att_t_ref:    (D, tn)  raw attributes, pre-transposed at init (matmul dtype)
    colscale_ref: (1, tn)  f32, exp(logit_scale) / ||att_j||  (precomputed at init)
    out_ref:      (tm, tn) logits tile
    rowscale_ref: (tm, 1)  f32 VMEM scratch: 1 / ||x_i||, cached across the C sweep
    """
    # Hoist the per-row x norm out of the j (C) sweep: compute once per row tile.
    @pl.when(pl.program_id(1) == 0)
    def _():
        xf = x_ref[...].astype(jnp.float32)
        rowscale_ref[...] = jax.lax.rsqrt(
            jnp.sum(xf * xf, axis=-1, keepdims=True))
        # TODO(synk): no epsilon on zero rows -- matches the torch module's bare
        # x / x.norm(), which yields nan/inf for zero-norm rows.

    x = x_ref[...]
    att = att_t_ref[...]
    if x.dtype != att.dtype:  # trace-time: force a single, intended MXU dtype path
        x = x.astype(att.dtype)

    # Plain MN matmul on raw operands -> f32 accumulation on the MXU.
    logits = jnp.dot(x, att, preferred_element_type=jnp.float32)       # (tm, tn)

    # Rank-1 epilogue: rows scaled by 1/||x_i||, cols by exp(s)/||att_j||.
    out_ref[...] = (logits * rowscale_ref[...] * colscale_ref[...]).astype(out_ref.dtype)


def _unit_classifier2_forward(x, att_t, col_scale, *, C, tn, tm_max, out_dtype,
                              vmem_budget):
    B, D = x.shape
    Dt, Cp = att_t.shape
    assert D == Dt, "feature dims must match"

    x_itemsize = x.dtype.itemsize
    att_itemsize = att_t.dtype.itemsize
    out_itemsize = jnp.dtype(out_dtype).itemsize

    # Row tile: sublane aligned; ensure >= 2 row tiles when B allows so both v7x
    # TensorCores get work along the "parallel" i axis.
    tm = min(_round_up(B, 8), tm_max)
    if B >= 16 and _ceil_div(B, tm) < 2:
        tm = _round_up(_ceil_div(B, 2), 8)

    def working_set(tm_):
        return (2 * tm_ * D * x_itemsize            # x tiles (double buffered)
                + 2 * D * tn * att_itemsize         # attribute tiles
                + 2 * tn * 4                        # column-scale tiles
                + 2 * tm_ * tn * out_itemsize       # output tiles
                + tm_ * 128 * 4)                    # row-scale scratch (lane padded)

    while working_set(tm) > vmem_budget and tm > 8:
        tm = max(8, _round_up(tm // 2, 8))

    grid_i = _ceil_div(B, tm)
    grid_j = _ceil_div(C, tn)

    # x is fetched once per row tile (its block index ignores j); attributes and
    # col_scale are re-streamed once per row tile -> include that factor.
    cost = pl.CostEstimate(
        flops=2 * (grid_i * tm) * (grid_j * tn) * D,
        transcendentals=grid_i * tm,                     # one rsqrt per row
        bytes_accessed=(grid_i * tm * D * x_itemsize
                        + grid_i * grid_j * tn * (D * att_itemsize + 4)
                        + B * C * out_itemsize),
    )

    # Explicit VMEM limit derived from the actual working set; conservative enough
    # for v7x's 64 MiB physical VMEM while still raising v5e's 16 MiB scoped default.
    vmem_limit = min(int(working_set(tm) * 1.5) + (2 << 20), 48 * 1024 * 1024)

    # TODO(synk): if profiling shows the att DMA exposed at small D, add
    # pipeline_mode=pl.Buffered(3) on the att_t BlockSpec (one extra tile of VMEM).
    return pl.pallas_call(
        _unit_classifier2_kernel,
        out_shape=jax.ShapeDtypeStruct((B, C), out_dtype),
        grid_spec=pltpu.PrefetchScalarGridSpec(
            num_scalar_prefetch=0,
            grid=(grid_i, grid_j),
            in_specs=[
                pl.BlockSpec((tm, D), lambda i, j: (i, 0)),    # x row tile
                pl.BlockSpec((D, tn), lambda i, j: (0, j)),    # attributes^T col tile
                pl.BlockSpec((1, tn), lambda i, j: (0, j)),    # exp(s)/||att_j||
            ],
            out_specs=pl.BlockSpec((tm, tn), lambda i, j: (i, j)),
            scratch_shapes=[pltpu.VMEM((tm, 1), jnp.float32)],  # 1/||x_i|| cache
        ),
        compiler_params=pltpu.CompilerParams(
            # i parallel (megacore sharding), j arbitrary so the row-scale scratch
            # written at j == 0 is valid for the rest of that row tile's C sweep.
            dimension_semantics=("parallel", "arbitrary"),
            vmem_limit_bytes=vmem_limit,
        ),
        cost_estimate=cost,
    )(x, att_t, col_scale)


class UnitClassifier2:
    """Pallas-TPU port of the torch UnitClassifier2 module.

    __init__ does all attribute preprocessing once (attributes is a fixed buffer in
    the torch module); __call__ runs only the tiled GEMM + rank-1 epilogue kernel.
    exp(logit_scale) is folded into the column scales at init; rebuild the object if
    logit_scale is retrained (one C*D pass, free relative to training).
    """

    def __init__(self, attributes, logit_scale=None, *,
                 matmul_dtype=None, out_dtype=jnp.float32,
                 tm_max=512, tn_max=1024,
                 vmem_budget_bytes=24 * 1024 * 1024):
        attributes = jnp.asarray(attributes)
        if logit_scale is None:
            logit_scale = jnp.asarray(np.log(1.0 / 0.07), dtype=jnp.float32)
        C, D = attributes.shape

        self.C = int(C)
        self.D = int(D)
        self.out_dtype = jnp.dtype(out_dtype)
        self.mm_dtype = (jnp.dtype(matmul_dtype) if matmul_dtype is not None
                         else attributes.dtype)
        self.tm_max = int(tm_max)
        self.vmem_budget = int(vmem_budget_bytes)

        # ---- one-time preprocessing (torch __init__ analogue) ------------------
        att_itemsize = self.mm_dtype.itemsize

        # Column tile: lane-dense multiple of 128, sized so the double-buffered
        # attribute stream stays well inside the VMEM budget even for large D.
        tn = min(_round_up(C, 128), int(tn_max))
        while tn > 128 and 2 * D * tn * att_itemsize > self.vmem_budget // 2:
            tn = _round_up(tn // 2, 128)
        self.tn = tn

        Cp = _round_up(C, tn)
        att_f32 = attributes.astype(jnp.float32)
        inv_norm = jax.lax.rsqrt(jnp.sum(att_f32 * att_f32, axis=-1))          # (C,)
        col_scale = jnp.exp(logit_scale).astype(jnp.float32) * inv_norm        # (C,)

        att_t = attributes.astype(self.mm_dtype).T                             # (D, C)
        if Cp != C:
            att_t = jnp.pad(att_t, ((0, 0), (0, Cp - C)))
            col_scale = jnp.pad(col_scale, (0, Cp - C))
        self.att_t = att_t                                                      # (D, Cp)
        self.col_scale = col_scale.reshape(1, Cp)                               # (1, Cp)

    def __call__(self, x):
        return _unit_classifier2_forward(
            x, self.att_t, self.col_scale,
            C=self.C, tn=self.tn, tm_max=self.tm_max,
            out_dtype=self.out_dtype, vmem_budget=self.vmem_budget)


def unit_classifier2_ref(x, attributes, logit_scale):
    xn = x / jnp.linalg.norm(x, axis=-1, keepdims=True)
    an = attributes / jnp.linalg.norm(attributes, axis=-1, keepdims=True)
    return jnp.exp(logit_scale) * xn @ an.T


if __name__ == "__main__":
    key = jax.random.PRNGKey(0)
    kx, katt, kx2, katt2 = jax.random.split(key, 4)
    logit_scale = jnp.asarray(np.log(1.0 / 0.07), dtype=jnp.float32)  # as in the module

    # Small shapes consistent with the module: image embeddings vs. class attributes.
    B, C, D = 8, 16, 32
    x = jax.random.normal(kx, (B, D), dtype=jnp.float32)
    attributes = jax.random.normal(katt, (C, D), dtype=jnp.float32)

    clf = UnitClassifier2(attributes, logit_scale)
    out = jax.block_until_ready(clf(x))
    ref = unit_classifier2_ref(x, attributes, logit_scale)
    np.testing.assert_allclose(np.asarray(out), np.asarray(ref), rtol=1e-5, atol=1e-5)

    # Non-aligned shapes: exercise partial row/column blocks (no per-call padding).
    B2, C2, D2 = 13, 200, 96
    x2 = jax.random.normal(kx2, (B2, D2), dtype=jnp.float32)
    att2 = jax.random.normal(katt2, (C2, D2), dtype=jnp.float32)
    clf2 = UnitClassifier2(att2, logit_scale)
    out2 = jax.block_until_ready(clf2(x2))
    ref2 = unit_classifier2_ref(x2, att2, logit_scale)
    np.testing.assert_allclose(np.asarray(out2), np.asarray(ref2), rtol=1e-5, atol=1e-5)

    # bf16 MXU-operand path (recommended on v5e/v6e); f32 epilogue & f32 output.
    clf3 = UnitClassifier2(att2, logit_scale, matmul_dtype=jnp.bfloat16)
    out3 = jax.block_until_ready(clf3(x2))
    np.testing.assert_allclose(np.asarray(out3), np.asarray(ref2), rtol=2e-2, atol=1e-1)

    print("KERNEL_OK")
</pallas_src>

<mosaic_0001>
module attributes {stable_mosaic.version = 11 : i64} {
  func.func @_unit_classifier2_kernel(%arg0: i32, %arg1: i32, %arg2: memref<8x32xf32, #tpu.memory_space<vmem>>, %arg3: memref<32x128xf32, #tpu.memory_space<vmem>>, %arg4: memref<1x128xf32, #tpu.memory_space<vmem>>, %arg5: memref<8x128xf32, #tpu.memory_space<vmem>>, %arg6: memref<8x1xf32, #tpu.memory_space<vmem>>) attributes {dimension_semantics = [#tpu.dimension_semantics<parallel>, #tpu.dimension_semantics<arbitrary>], iteration_bounds = array<i64: 1, 1>, scalar_prefetch = 0 : i64, scratch_operands = 1 : i64, tpu.core_type = #tpu.core_type<tc>, window_params = [{transform_indices = @transform_0, window_bounds = array<i64: 8, 32>}, {transform_indices = @transform_1, window_bounds = array<i64: 32, 128>}, {transform_indices = @transform_2, window_bounds = array<i64: 1, 128>}, {transform_indices = @transform_3, window_bounds = array<i64: 8, 128>}]} {
    %c0_i32 = arith.constant 0 : i32
    %0 = arith.cmpi eq, %arg1, %c0_i32 : i32
    %1 = arith.extui %0 : i1 to i32
    %c0_i32_0 = arith.constant 0 : i32
    %2 = arith.cmpi ne, %1, %c0_i32_0 : i32
    scf.if %2 {
      %c0_10 = arith.constant 0 : index
      %c0_11 = arith.constant 0 : index
      %13 = vector.load %arg2[%c0_10, %c0_11] : memref<8x32xf32, #tpu.memory_space<vmem>>, vector<8x32xf32>
      %14 = arith.mulf %13, %13 : vector<8x32xf32>
      %cst_12 = arith.constant dense<0.000000e+00> : vector<8xf32>
      %15 = vector.multi_reduction <add>, %14, %cst_12 [1] : vector<8x32xf32> to vector<8xf32>
      %16 = vector.shape_cast %15 : vector<8xf32> to vector<8x1xf32>
      %17 = math.rsqrt %16 : vector<8x1xf32>
      %c0_13 = arith.constant 0 : index
      %c0_14 = arith.constant 0 : index
      %18 = vector.load %arg6[%c0_13, %c0_14] : memref<8x1xf32, #tpu.memory_space<vmem>>, vector<8x1xf32>
      tpu.vector_store %arg6[%c0_13, %c0_14], %17 {strides = array<i32>} : memref<8x1xf32, #tpu.memory_space<vmem>>, vector<8x1xf32>,
    } else {
    }
    %c0 = arith.constant 0 : index
    %c0_1 = arith.constant 0 : index
    %3 = vector.load %arg2[%c0, %c0_1] : memref<8x32xf32, #tpu.memory_space<vmem>>, vector<8x32xf32>
    %c0_2 = arith.constant 0 : index
    %c0_3 = arith.constant 0 : index
    %4 = vector.load %arg3[%c0_2, %c0_3] : memref<32x128xf32, #tpu.memory_space<vmem>>, vector<32x128xf32>
    %cst = arith.constant dense<0.000000e+00> : vector<8x128xf32>
    %5 = tpu.matmul %3, %4, %cst {dimension_numbers = #tpu.dot_dimension_numbers<[1], [0], [0], [1], [0, 0, 1, 1], [], []>} : vector<8x32xf32>, vector<32x128xf32>, vector<8x128xf32> -> vector<8x128xf32>
    %c0_4 = arith.constant 0 : index
    %c0_5 = arith.constant 0 : index
    %6 = vector.load %arg6[%c0_4, %c0_5] : memref<8x1xf32, #tpu.memory_space<vmem>>, vector<8x1xf32>
    %7 = vector.broadcast %6 : vector<8x1xf32> to vector<8x128xf32>
    %8 = arith.mulf %5, %7 : vector<8x128xf32>
    %c0_6 = arith.constant 0 : index
    %c0_7 = arith.constant 0 : index
    %9 = vector.load %arg4[%c0_6, %c0_7] : memref<1x128xf32, #tpu.memory_space<vmem>>, vector<1x128xf32>
    %10 = vector.broadcast %9 : vector<1x128xf32> to vector<8x128xf32>
    %11 = arith.mulf %8, %10 : vector<8x128xf32>
    %c0_8 = arith.constant 0 : index
    %c0_9 = arith.constant 0 : index
    %12 = vector.load %arg5[%c0_8, %c0_9] : memref<8x128xf32, #tpu.memory_space<vmem>>, vector<8x128xf32>
    tpu.vector_store %arg5[%c0_8, %c0_9], %11 {strides = array<i32>} : memref<8x128xf32, #tpu.memory_space<vmem>>, vector<8x128xf32>,
    return
  }
  func.func @transform_0(%arg0: i32, %arg1: i32) -> (i32, i32) {
    %c0_i32 = arith.constant 0 : i32
    %c0_i32_0 = arith.constant 0 : i32
    return %arg0, %c0_i32 : i32, i32
  }
  func.func @transform_1(%arg0: i32, %arg1: i32) -> (i32, i32) {
    %c0_i32 = arith.constant 0 : i32
    %c0_i32_0 = arith.constant 0 : i32
    return %c0_i32, %arg1 : i32, i32
  }
  func.func @transform_2(%arg0: i32, %arg1: i32) -> (i32, i32) {
    %c0_i32 = arith.constant 0 : i32
    %c0_i32_0 = arith.constant 0 : i32
    return %c0_i32, %arg1 : i32, i32
  }
  func.func @transform_3(%arg0: i32, %arg1: i32) -> (i32, i32) {
    %c0_i32 = arith.constant 0 : i32
    return %arg0, %arg1 : i32, i32
  }
}

</mosaic_0001>

<bundles_post_ra>
// kernel: tpu_custom_call.1
= control target key start
LH: loop header
LB: loop body
LE: loop exit
PB: predicated region body
PF: predicated region fallthrough
CT: control target
= control target key end

     0   :  { %8 = vsyncpa [#allocation4], 0  ;;  %s348_s0 = inlined_call_operand.hbm [shape: f32[8,32], index: 0, kind: input, shape index: {}]   ;;  %s349_s1 = inlined_call_operand.hbm [shape: f32[32,128], index: 1, kind: input, shape index: {}]   ;;  %s350_s2 = inlined_call_operand.vmem [shape: f32[1,128], index: 2, kind: input, shape index: {}]   ;;  %s351_s3 = inlined_call_operand.hbm [shape: f32[8,16], index: 3, kind: output, shape index: {}]  }
   0x1   :  { %9 = vsyncpa [#allocation7], 0 }
   0x2   :  { %10 = vsyncpa [#allocation5], 0  ;;  %s273_s12 = smov [#allocation3]   ;;  %s274_s14 = smov [#allocation6]  }
   0x3   :  { %s17_s13 = sshll.u32 %s273_s12, 4  ;;  %s26_s15 = sshll.u32 %s274_s14, 4  ;;  %s18_s13 = int_to_ptr.vmem [resolvable:$true] %s17_s13  ;;  %s302_s15 = int_to_ptr.vmem [resolvable:$true] %s26_s15 }
   0x4   :  { %s201_s18 = scalar_lea.hbm %s348_s0, 128 }
   0x5   :  { %p202_p0 = scmp.ne.s32.totalorder %s348_s0, %s201_s18  ;;  %p205_p1 = scmp.lt.u32.totalorder %s201_s18, %s348_s0 }
   0x7   :  { %p207_p2 = pnand %p205_p1, %p202_p0 }
   0x9   :  { %210 = shalt.err (!%p207_p2)
}
   0xa   :  { %s211_s23 = scalar_lea.vmem %s18_s13, 128  ;;  %p216_p4 = scmp.lt.s32.totalorder %s18_s13, %s18_s13 }
   0xb   :  { %p212_p3 = scmp.ne.s32.totalorder %s18_s13, %s211_s23  ;;  %p217_p5 = scmp.lt.s32.totalorder %s211_s23, %s211_s23 }
   0xd   :  { %p218_p6 = por %p217_p5, %p216_p4 }
   0xf   :  { %p219_p7 = pnand %p218_p6, %p212_p3 }
  0x11   :  { %222 = shalt.err (!%p219_p7)
}
  0x12   :  { %20 = dma.hbm_to_vmem [thread:$0]  %s348_s0, 128, %s18_s13, [#allocation4]  }
  0x13   :  { %s223_s28 = scalar_lea.hbm %s349_s1, 512 }
  0x14   :  { %p224_p8 = scmp.ne.s32.totalorder %s349_s1, %s223_s28  ;;  %p227_p9 = scmp.lt.u32.totalorder %s223_s28, %s349_s1 }
  0x16   :  { %p229_p10 = pnand %p227_p9, %p224_p8 }
  0x18   :  { %232 = shalt.err (!%p229_p10)
}
  0x19   :  { %s233_s6 = scalar_lea.vmem %s302_s15, 512  ;;  %p238_p12 = scmp.lt.s32.totalorder %s302_s15, %s302_s15 }
  0x1a   :  { %p234_p11 = scmp.ne.s32.totalorder %s302_s15, %s233_s6  ;;  %p239_p13 = scmp.lt.s32.totalorder %s233_s6, %s233_s6 }
  0x1c   :  { %p240_p0 = por %p239_p13, %p238_p12 }
  0x1e   :  { %p241_p1 = pnand %p240_p0, %p234_p11 }
  0x20   :  { %244 = shalt.err (!%p241_p1)
}
  0x21   :  { %s275_s0 = smov 128   ;;  %s276_s7 = smov 8  }
  0x22   :  { %32 = dma.hbm_to_vmem [thread:$0]  %s349_s1, 512, %s302_s15, [#allocation7], %s275_s0, %s275_s0, %s276_s7  }
  0x23   :  { %267 = dma.done.wait [#allocation4], 128  }
  0x24   :  { %268 = vsyncadd [#allocation4], 4294967168 }
  0x25   :  { %269 = dma.done.wait [#allocation7], 512  }
  0x26   :  { %270 = vsyncadd [#allocation7], 4294966784  ;;  %v277_v0 = vmov 0.0|0.0   ;;  %vm278_vm0 = vmmov 0   ;;  %v279_v1 = vmov 0.0   ;;  %v45_v2 = vld [vmem:[#allocation3] sm:$0xff] }
  0x27   :  { %183 = vmatprep.subr.bf16.mxu0 %v277_v0  ;;  %180 = vmatprep.mubr.msk.f32.mxu0 %vm278_vm0, %v279_v1  ;;  %vm47_vm1 = vcmask 261120   ;;  %v55_v3 = vld [vmem:[#allocation6] sm:$0xff]  ;;  %v56_v4 = vld [vmem:[#allocation6 + $0x8] sm:$0xff]  ;;  %v46_v5 = vmul.f32 %v45_v2, %v45_v2  ;;  %v57_v7 = vld [vmem:[#allocation6 + $0x10] sm:$0xff]  ;;  %v280_v11 = vmov 0   ;;  %vm52_vm2 = vcmask 7168  }
  0x28   :  { %v184_v6 = vpack.c.bf16 %v56_v4, %v55_v3  ;;  %v58_v8 = vld [vmem:[#allocation6 + $0x18] sm:$0xff]  ;;  %198 = vset.pattern.permute.xlu0 %v280_v11  ;;  %v166_v17 = vld [vmem:[%s350_s2] ss:$0 sm:$0xff]  ;;  %s281_s11 = smov [#allocation8]  }
  0x29   :  { %v48_v9 = vsel %vm47_vm1, %v46_v5, 0.0  ;;  %v187_v10 = vpack.c.bf16 %v58_v8, %v57_v7  ;;  %s155_s12 = sshll.u32 %s281_s11, 4  ;;  %s156_s12 = int_to_ptr.vmem [resolvable:$true] %s155_s12 }
  0x2a   :  { %185 = vmatpush3.bf16.msra.mxu0 %v184_v6  ;;  %49 = vadd.xlane.f32.xlu0 %v48_v9  ;;  %s245_s13 = scalar_lea.vmem %s156_s12, 128  ;;  %p250_p3 = scmp.lt.s32.totalorder %s156_s12, %s156_s12 }
  0x2b   :  { %186 = vmatprep.subr.bf16.mxu0 %v277_v0  ;;  %p246_p2 = scmp.ne.s32.totalorder %s156_s12, %s245_s13  ;;  %p251_p4 = scmp.lt.s32.totalorder %s245_s13, %s245_s13 }
  0x2d   :  { %p252_p5 = por %p251_p4, %p250_p3 }
  0x2e   :  { %188 = vmatpush3.bf16.msra.mxu0 %v187_v10 }
  0x2f   :  { %p253_p6 = pnand %p252_p5, %p246_p2 }
  0x31   :  { %181 = vmatmul.mubr.msk.f32.vlgmr.msra.gmra.mrb[0].mxu0 %vm47_vm1, %v45_v2 }
  0xb7   :  { %v50_v12 = vpop.xlane.xlu0 %49 }
  0xb8   :  { %199 = vrsqrt.f32 %v50_v12 }
  0xc2   :  { %v200_v13 = vpop.eup %199 }
  0xc3   :  { %53 = vst.msk [vmem:[#allocation2] sm:$0xff] %vm52_vm2, %v200_v13 }
  0xca   :  { %v133_v14 = vld [vmem:[#allocation2] sm:$0xff] }
  0xcb   :  { %136 = vperm.xlu0 %198, %v133_v14  }
 0x104   :  { %v129_v15 = vpop.f32.mrb[0].mxu0 }
 0x105   :  { %v182_v16 = vpop.f32.mrb[1].mxu0 }
 0x14a   :  { %v137_v18 = vpop.permute.xlu0 %136 }
 0x14b   :  { %v139_v19 = vmul.f32 %v137_v18, %v129_v15 }
 0x14d   :  { %v147_v20 = vmul.f32 %v166_v17, %v139_v19 }
 0x14f   :  { %148 = vst [vmem:[#allocation8] sm:$0xff] %v147_v20 }
 0x150   :  { %256 = shalt.err (!%p253_p6)
}
 0x151   :  { %s257_s16 = scalar_lea.hbm %s351_s3, 128 }
 0x152   :  { %p258_p7 = scmp.ne.s32.totalorder %s351_s3, %s257_s16  ;;  %p261_p8 = scmp.lt.u32.totalorder %s257_s16, %s351_s3 }
 0x154   :  { %p263_p9 = pnand %p261_p8, %p258_p7 }
 0x156   :  { %266 = shalt.err (!%p263_p9)
}
 0x157   :  { %158 = dma.vmem_to_hbm [thread:$0]  %s156_s12, 128, %s351_s3, [#allocation5]  }
 0x158   :  { %271 = dma.done.wait [#allocation5], 128  }
 0x159   :  { %272 = vsyncadd [#allocation5], 4294967168 }
 0x15a   :  { %162 = vsyncpa [#allocation4], 1 }
 0x15b   :  { %163 = vsyncpa [#allocation7], 1 }
 0x15c   :  { %164 = vsyncpa [#allocation5], 1 }

</bundles_post_ra>
